<compile_context>
chip_gen: v7x
topology: tpu7x:2x2x1
jax: 0.10.0
libtpu: 0.0.40
codegen_flags: <defaults>
</compile_context>

<pallas_src>
import math

import jax
import jax.numpy as jnp
from jax.experimental import pallas as pl
from jax.experimental.pallas import tpu as pltpu

_LANE = 128
_SUBLANE = 8


def _round_up(x, m):
    return ((x + m - 1) // m) * m


def _cdiv(a, b):
    return (a + b - 1) // b


def _padded_2d_bytes(a):
    """Actual VMEM footprint of a 2-D block after (8, 128) tile padding."""
    r, c = a.shape
    return _round_up(r, _SUBLANE) * _round_up(c, _LANE) * a.dtype.itemsize


def _vmem_capacity_bytes():
    """Best-effort physical per-core VMEM query (conservative fallback)."""
    cap = 128 * 1024 * 1024
    try:
        info = pltpu.get_tpu_info()
        cap = int(getattr(info, "vmem_capacity_bytes", cap))
    except Exception:
        pass
    return cap


def mlp_kernel(x_ref, w1_ref, b1_ref, w2_ref, b2_ref, w3_ref, b3_ref, o_ref):
    # x_ref : (tile_rows, P*n_in)   -- P batch rows packed per lane-dense row
    # wK    : block-diagonal packed weights (P copies of the tiny layer weight)
    # bK    : (1, P*out_features)   -- packed biases, f32
    # o_ref : (tile_rows, P)        -- packed sigmoid output, f32
    #
    # All matmuls are standard (m, k) @ (k, n) with the streamed data as LHS and
    # small resident weights as RHS -> no transposed-operand dot_general, so
    # Mosaic never relayouts the big x tile (review item #2).
    h = jnp.dot(x_ref[...], w1_ref[...], preferred_element_type=jnp.float32)
    h = jnp.maximum(h + b1_ref[...], 0.0)
    h = jnp.dot(h, w2_ref[...], preferred_element_type=jnp.float32)
    h = jnp.maximum(h + b2_ref[...], 0.0)
    h = jnp.dot(h, w3_ref[...], preferred_element_type=jnp.float32)
    o_ref[...] = jax.nn.sigmoid(h + b3_ref[...]).astype(o_ref.dtype)


def mlp_forward(x, params, *, max_tile_b=None):
    """Fused MLP forward.  x: (B, n_inputs) f32 or bf16 -> (B, 1) f32."""
    w1, b1, w2, b2, w3, b3 = params
    B, n_in = x.shape
    x_bytes = x.dtype.itemsize

    # ---- Batch-packing factor: pack P batch rows per VMEM row so the streamed
    # x block uses (close to) all 128 lanes.  Degenerates to P=1 for wide inputs.
    P = 1
    while 2 * P * n_in <= _LANE and 2 * P <= 32:
        P *= 2

    # ---- Packed parameters (tiny, built once).  kron(I_P, W.T) applies the
    # same layer independently to each of the P packed batch rows.
    w1p = jnp.kron(jnp.eye(P, dtype=jnp.float32), w1.T.astype(jnp.float32))
    w2p = jnp.kron(jnp.eye(P, dtype=jnp.float32), w2.T.astype(jnp.float32))
    w3p = jnp.kron(jnp.eye(P, dtype=jnp.float32), w3.T.astype(jnp.float32))
    w1p = w1p.astype(x.dtype)  # bf16 x => native bf16 first matmul (f32 accum)
    b1p = jnp.tile(b1.reshape(1, -1).astype(jnp.float32), (1, P))
    b2p = jnp.tile(b2.reshape(1, -1).astype(jnp.float32), (1, P))
    b3p = jnp.tile(b3.reshape(1, -1).astype(jnp.float32), (1, P))
    packed_params = (w1p, b1p, w2p, b2p, w3p, b3p)

    # ---- VMEM-aware tile sizing using the *padded* per-row footprints.
    x_row_bytes = _round_up(P * n_in, _LANE) * x_bytes       # packed x row in VMEM
    out_row_bytes = _LANE * 4                                # (rows, P) f32 block lane-pads P->128
    w_bytes = sum(_padded_2d_bytes(a) for a in packed_params)

    cap = _vmem_capacity_bytes()
    # Use as much VMEM as safely fits on every generation: v7x (64 MiB/core,
    # 3.2 TB/s HBM) wants the largest tile it can hold to amortize the ~0.35us
    # per-grid-step overhead; v5e/v6e are already at roofline with much smaller
    # tiles, and the explicit vmem_limit_bytes below overrides their 16/32 MiB
    # scoped-VMEM defaults so this sizing never triggers a compile failure.
    total_budget = min(cap // 2, 28 * 1024 * 1024)
    avail = max(total_budget - 2 * w_bytes, 64 * 1024)
    per_row = 2 * (x_row_bytes + out_row_bytes)              # double-buffered in + out
    max_rows = max(_SUBLANE, (avail // per_row) // _SUBLANE * _SUBLANE)
    # Cap each streamed x buffer at ~8 MiB (guards very wide n_inputs).  For
    # inputs so wide that even 8 packed rows overflow VMEM, add a second
    # ("arbitrary") grid axis over n_in chunks -- unnecessary for this module.
    max_rows = min(max_rows,
                   max(_SUBLANE,
                       ((8 * 1024 * 1024) // x_row_bytes) // _SUBLANE * _SUBLANE))
    if max_tile_b is not None:
        max_rows = min(max_rows,
                       max(_SUBLANE, (max_tile_b // P) // _SUBLANE * _SUBLANE))

    # ---- Grid: >= 2 steps whenever there is enough work so the batch axis can
    # be sharded across both TensorCores on v7x.
    rows_total = _cdiv(B, P)
    num_tiles = _cdiv(rows_total, max_rows)
    if rows_total > _SUBLANE:
        num_tiles = max(num_tiles, 2)
    tile_rows = _round_up(_cdiv(rows_total, num_tiles), _SUBLANE)
    B_pad = num_tiles * tile_rows * P

    if B_pad != B:
        x = jnp.pad(x, ((0, B_pad - B), (0, 0)))
    x_packed = x.reshape(B_pad // P, P * n_in)               # free row-major reshape

    vmem_used = 2 * tile_rows * (x_row_bytes + out_row_bytes) + 2 * w_bytes
    vmem_limit = max(16 * 1024 * 1024,
                     min(cap * 3 // 4, vmem_used + 8 * 1024 * 1024))

    cost = pl.CostEstimate(
        flops=2 * B_pad * (n_in * 8 + 8 * 4 + 4 * 1),
        transcendentals=B_pad,
        bytes_accessed=B_pad * n_in * x_bytes + B_pad * 4
        + sum(int(a.size) * a.dtype.itemsize for a in packed_params),
    )

    def const_spec(a):
        # Weights/biases: same block every grid step -> stay resident in VMEM.
        return pl.BlockSpec(a.shape, lambda i: (0, 0))

    out_packed = pl.pallas_call(
        mlp_kernel,
        out_shape=jax.ShapeDtypeStruct((B_pad // P, P), jnp.float32),
        grid=(num_tiles,),
        in_specs=[pl.BlockSpec((tile_rows, P * n_in), lambda i: (i, 0))]
        + [const_spec(a) for a in packed_params],
        out_specs=pl.BlockSpec((tile_rows, P), lambda i: (i, 0)),
        compiler_params=pltpu.CompilerParams(
            dimension_semantics=("parallel",),
            vmem_limit_bytes=int(vmem_limit),
        ),
        cost_estimate=cost,
    )(x_packed, *packed_params)

    # Unpack to the PyTorch (B, 1) layout (free reshape) and drop padded rows.
    return out_packed.reshape(B_pad, 1)[:B]


def init_params(key, n_inputs):
    """Deterministic init mimicking the PyTorch module's __init__.

    kaiming_uniform_(nonlinearity='relu') for hidden1/hidden2 weights,
    xavier_uniform_ for hidden3 weight, PyTorch-default uniform for biases.
    Weights in PyTorch (out, in) layout; biases are (out,).
    """
    k1, k2, k3, kb1, kb2, kb3 = jax.random.split(key, 6)

    def kaiming_uniform(k, out_f, in_f):
        bound = math.sqrt(2.0) * math.sqrt(3.0 / in_f)
        return jax.random.uniform(k, (out_f, in_f), jnp.float32, -bound, bound)

    def xavier_uniform(k, out_f, in_f):
        bound = math.sqrt(6.0 / (in_f + out_f))
        return jax.random.uniform(k, (out_f, in_f), jnp.float32, -bound, bound)

    def bias_init(k, out_f, in_f):
        bound = 1.0 / math.sqrt(in_f)
        return jax.random.uniform(k, (out_f,), jnp.float32, -bound, bound)

    w1 = kaiming_uniform(k1, 8, n_inputs)
    b1 = bias_init(kb1, 8, n_inputs)
    w2 = kaiming_uniform(k2, 4, 8)
    b2 = bias_init(kb2, 4, 8)
    w3 = xavier_uniform(k3, 1, 4)
    b3 = bias_init(kb3, 1, 4)
    return (w1, b1, w2, b2, w3, b3)


def mlp_ref(x, params):
    """Pure-JAX reference for correctness checking."""
    w1, b1, w2, b2, w3, b3 = params
    h1 = jnp.maximum(x @ w1.T + b1, 0.0)
    h2 = jnp.maximum(h1 @ w2.T + b2, 0.0)
    return jax.nn.sigmoid(h2 @ w3.T + b3)


if __name__ == "__main__":
    key = jax.random.PRNGKey(0)
    kx, kp, kx2, kx3, kp3 = jax.random.split(key, 5)

    n_inputs = 16
    params = init_params(kp, n_inputs)

    # 1) Small batch consistent with the module's forward (single grid step).
    x = jax.random.normal(kx, (8, n_inputs), dtype=jnp.float32)
    out = jax.block_until_ready(mlp_forward(x, params))
    assert out.shape == (8, 1)
    assert jnp.allclose(out, mlp_ref(x, params), atol=1e-5, rtol=1e-5)

    # 2) Non-multiple batch: exercises padding + the multi-step (>=2) grid path.
    x2 = jax.random.normal(kx2, (1000, n_inputs), dtype=jnp.float32)
    out2 = jax.block_until_ready(mlp_forward(x2, params))
    assert out2.shape == (1000, 1)
    assert jnp.allclose(out2, mlp_ref(x2, params), atol=1e-5, rtol=1e-5)

    # 3) bf16-streamed input (halves HBM read bytes; f32 MXU accumulation).
    x2_bf16 = x2.astype(jnp.bfloat16)
    out3 = jax.block_until_ready(mlp_forward(x2_bf16, params))
    ref3 = mlp_ref(x2_bf16.astype(jnp.float32), params)
    assert out3.shape == (1000, 1)
    assert jnp.allclose(out3, ref3, atol=3e-2)

    # 4) Wide-input configuration: packing degenerates cleanly to P=1.
    n_wide = 160
    params_w = init_params(kp3, n_wide)
    xw = jax.random.normal(kx3, (300, n_wide), dtype=jnp.float32)
    outw = jax.block_until_ready(mlp_forward(xw, params_w))
    assert outw.shape == (300, 1)
    assert jnp.allclose(outw, mlp_ref(xw, params_w), atol=1e-4, rtol=1e-4)

    print("KERNEL_OK")
</pallas_src>

<mosaic_0001>
module attributes {stable_mosaic.version = 11 : i64} {
  func.func @mlp_kernel(%arg0: i32, %arg1: memref<8x128xf32, #tpu.memory_space<vmem>>, %arg2: memref<128x64xf32, #tpu.memory_space<vmem>>, %arg3: memref<1x64xf32, #tpu.memory_space<vmem>>, %arg4: memref<64x32xf32, #tpu.memory_space<vmem>>, %arg5: memref<1x32xf32, #tpu.memory_space<vmem>>, %arg6: memref<32x8xf32, #tpu.memory_space<vmem>>, %arg7: memref<1x8xf32, #tpu.memory_space<vmem>>, %arg8: memref<8x8xf32, #tpu.memory_space<vmem>>) attributes {dimension_semantics = [#tpu.dimension_semantics<parallel>], iteration_bounds = array<i64: 1>, scalar_prefetch = 0 : i64, scratch_operands = 0 : i64, tpu.core_type = #tpu.core_type<tc>, window_params = [{transform_indices = @transform_0, window_bounds = array<i64: 8, 128>}, {pipeline_mode = #tpu.pipeline_mode<synchronous>, transform_indices = @transform_1, window_bounds = array<i64: 128, 64>}, {pipeline_mode = #tpu.pipeline_mode<synchronous>, transform_indices = @transform_2, window_bounds = array<i64: 1, 64>}, {pipeline_mode = #tpu.pipeline_mode<synchronous>, transform_indices = @transform_3, window_bounds = array<i64: 64, 32>}, {pipeline_mode = #tpu.pipeline_mode<synchronous>, transform_indices = @transform_4, window_bounds = array<i64: 1, 32>}, {pipeline_mode = #tpu.pipeline_mode<synchronous>, transform_indices = @transform_5, window_bounds = array<i64: 32, 8>}, {pipeline_mode = #tpu.pipeline_mode<synchronous>, transform_indices = @transform_6, window_bounds = array<i64: 1, 8>}, {transform_indices = @transform_7, window_bounds = array<i64: 8, 8>}]} {
    %c0 = arith.constant 0 : index
    %c0_0 = arith.constant 0 : index
    %0 = vector.load %arg1[%c0, %c0_0] : memref<8x128xf32, #tpu.memory_space<vmem>>, vector<8x128xf32>
    %c0_1 = arith.constant 0 : index
    %c0_2 = arith.constant 0 : index
    %1 = vector.load %arg2[%c0_1, %c0_2] : memref<128x64xf32, #tpu.memory_space<vmem>>, vector<128x64xf32>
    %cst = arith.constant dense<0.000000e+00> : vector<8x64xf32>
    %2 = tpu.matmul %0, %1, %cst {dimension_numbers = #tpu.dot_dimension_numbers<[1], [0], [0], [1], [0, 0, 1, 1], [], []>} : vector<8x128xf32>, vector<128x64xf32>, vector<8x64xf32> -> vector<8x64xf32>
    %c0_3 = arith.constant 0 : index
    %c0_4 = arith.constant 0 : index
    %3 = vector.load %arg3[%c0_3, %c0_4] : memref<1x64xf32, #tpu.memory_space<vmem>>, vector<1x64xf32>
    %4 = vector.broadcast %3 : vector<1x64xf32> to vector<8x64xf32>
    %5 = arith.addf %2, %4 : vector<8x64xf32>
    %cst_5 = arith.constant 0.000000e+00 : f32
    %6 = vector.broadcast %cst_5 : f32 to vector<8x64xf32>
    %7 = arith.maximumf %5, %6 : vector<8x64xf32>
    %c0_6 = arith.constant 0 : index
    %c0_7 = arith.constant 0 : index
    %8 = vector.load %arg4[%c0_6, %c0_7] : memref<64x32xf32, #tpu.memory_space<vmem>>, vector<64x32xf32>
    %cst_8 = arith.constant dense<0.000000e+00> : vector<8x32xf32>
    %9 = tpu.matmul %7, %8, %cst_8 {dimension_numbers = #tpu.dot_dimension_numbers<[1], [0], [0], [1], [0, 0, 1, 1], [], []>} : vector<8x64xf32>, vector<64x32xf32>, vector<8x32xf32> -> vector<8x32xf32>
    %c0_9 = arith.constant 0 : index
    %c0_10 = arith.constant 0 : index
    %10 = vector.load %arg5[%c0_9, %c0_10] : memref<1x32xf32, #tpu.memory_space<vmem>>, vector<1x32xf32>
    %11 = vector.broadcast %10 : vector<1x32xf32> to vector<8x32xf32>
    %12 = arith.addf %9, %11 : vector<8x32xf32>
    %cst_11 = arith.constant 0.000000e+00 : f32
    %13 = vector.broadcast %cst_11 : f32 to vector<8x32xf32>
    %14 = arith.maximumf %12, %13 : vector<8x32xf32>
    %c0_12 = arith.constant 0 : index
    %c0_13 = arith.constant 0 : index
    %15 = vector.load %arg6[%c0_12, %c0_13] : memref<32x8xf32, #tpu.memory_space<vmem>>, vector<32x8xf32>
    %cst_14 = arith.constant dense<0.000000e+00> : vector<8x8xf32>
    %16 = tpu.matmul %14, %15, %cst_14 {dimension_numbers = #tpu.dot_dimension_numbers<[1], [0], [0], [1], [0, 0, 1, 1], [], []>} : vector<8x32xf32>, vector<32x8xf32>, vector<8x8xf32> -> vector<8x8xf32>
    %c0_15 = arith.constant 0 : index
    %c0_16 = arith.constant 0 : index
    %17 = vector.load %arg7[%c0_15, %c0_16] : memref<1x8xf32, #tpu.memory_space<vmem>>, vector<1x8xf32>
    %18 = vector.broadcast %17 : vector<1x8xf32> to vector<8x8xf32>
    %19 = arith.addf %16, %18 : vector<8x8xf32>
    %20 = arith.negf %19 : vector<8x8xf32>
    %21 = math.exp %20 : vector<8x8xf32>
    %cst_17 = arith.constant 1.000000e+00 : f32
    %22 = vector.broadcast %cst_17 : f32 to vector<8x8xf32>
    %23 = arith.addf %22, %21 : vector<8x8xf32>
    %24 = arith.divf %22, %23 : vector<8x8xf32>
    %c0_18 = arith.constant 0 : index
    %c0_19 = arith.constant 0 : index
    %25 = vector.load %arg8[%c0_18, %c0_19] : memref<8x8xf32, #tpu.memory_space<vmem>>, vector<8x8xf32>
    tpu.vector_store %arg8[%c0_18, %c0_19], %24 {strides = array<i32>} : memref<8x8xf32, #tpu.memory_space<vmem>>, vector<8x8xf32>,
    return
  }
  func.func @transform_0(%arg0: i32) -> (i32, i32) {
    %c0_i32 = arith.constant 0 : i32
    %c0_i32_0 = arith.constant 0 : i32
    return %arg0, %c0_i32 : i32, i32
  }
  func.func @transform_1(%arg0: i32) -> (i32, i32) {
    %c0_i32 = arith.constant 0 : i32
    %c0_i32_0 = arith.constant 0 : i32
    %c0_i32_1 = arith.constant 0 : i32
    return %c0_i32, %c0_i32_0 : i32, i32
  }
  func.func @transform_2(%arg0: i32) -> (i32, i32) {
    %c0_i32 = arith.constant 0 : i32
    %c0_i32_0 = arith.constant 0 : i32
    %c0_i32_1 = arith.constant 0 : i32
    return %c0_i32, %c0_i32_0 : i32, i32
  }
  func.func @transform_3(%arg0: i32) -> (i32, i32) {
    %c0_i32 = arith.constant 0 : i32
    %c0_i32_0 = arith.constant 0 : i32
    %c0_i32_1 = arith.constant 0 : i32
    return %c0_i32, %c0_i32_0 : i32, i32
  }
  func.func @transform_4(%arg0: i32) -> (i32, i32) {
    %c0_i32 = arith.constant 0 : i32
    %c0_i32_0 = arith.constant 0 : i32
    %c0_i32_1 = arith.constant 0 : i32
    return %c0_i32, %c0_i32_0 : i32, i32
  }
  func.func @transform_5(%arg0: i32) -> (i32, i32) {
    %c0_i32 = arith.constant 0 : i32
    %c0_i32_0 = arith.constant 0 : i32
    %c0_i32_1 = arith.constant 0 : i32
    return %c0_i32, %c0_i32_0 : i32, i32
  }
  func.func @transform_6(%arg0: i32) -> (i32, i32) {
    %c0_i32 = arith.constant 0 : i32
    %c0_i32_0 = arith.constant 0 : i32
    %c0_i32_1 = arith.constant 0 : i32
    return %c0_i32, %c0_i32_0 : i32, i32
  }
  func.func @transform_7(%arg0: i32) -> (i32, i32) {
    %c0_i32 = arith.constant 0 : i32
    %c0_i32_0 = arith.constant 0 : i32
    return %arg0, %c0_i32 : i32, i32
  }
}

</mosaic_0001>

<bundles_post_ra>
// kernel: tpu_custom_call.1
= control target key start
LH: loop header
LB: loop body
LE: loop exit
PB: predicated region body
PF: predicated region fallthrough
CT: control target
= control target key end

     0   :  { %v495_v3 = vmov 0.0|0.0   ;;  %vm496_vm0 = vmmov 0   ;;  %v497_v6 = vmov 0.0   ;;  %s667_s0 = inlined_call_operand.vmem [shape: f32[8,128], index: 0, kind: input, shape index: {}]   ;;  %s668_s1 = inlined_call_operand.vmem [shape: f32[128,64], index: 1, kind: input, shape index: {}]   ;;  %s669_s2 = inlined_call_operand.vmem [shape: f32[1,64], index: 2, kind: input, shape index: {}]   ;;  %s670_s3 = inlined_call_operand.vmem [shape: f32[64,32], index: 3, kind: input, shape index: {}]   ;;  %s671_s4 = inlined_call_operand.vmem [shape: f32[1,32], index: 4, kind: input, shape index: {}]   ;;  %s672_s5 = inlined_call_operand.vmem [shape: f32[32,8], index: 5, kind: input, shape index: {}]   ;;  %s673_s6 = inlined_call_operand.vmem [shape: f32[1,8], index: 6, kind: input, shape index: {}]   ;;  %s674_s7 = inlined_call_operand.hbm [shape: f32[8,8], index: 7, kind: output, shape index: {}]  }
   0x1   :  { %v28_v0 = vld [vmem:[%s668_s1] sm:$0xff]  ;;  %v29_v1 = vld [vmem:[%s668_s1 + $0x8] sm:$0xff]  ;;  %v30_v2 = vld [vmem:[%s668_s1 + $0x10] sm:$0xff]  ;;  %421 = vmatprep.subr.bf16.mxu0 %v495_v3  ;;  %388 = vmatprep.mubr.msk.f32.mxu0 %vm496_vm0, %v497_v6 }
   0x2   :  { %v422_v4 = vpack.c.bf16 %v29_v1, %v28_v0  ;;  %v31_v5 = vld [vmem:[%s668_s1 + $0x18] sm:$0xff]  ;;  %445 = vmatprep.subr.bf16.mxu1 %v495_v3  ;;  %407 = vmatprep.mubr.msk.f32.mxu1 %vm496_vm0, %v497_v6  ;;  %v32_v8 = vld [vmem:[%s668_s1 + $0x20] sm:$0xff]  ;;  %v33_v9 = vld [vmem:[%s668_s1 + $0x28] sm:$0xff] }
   0x3   :  { %v425_v7 = vpack.c.bf16 %v31_v5, %v30_v2  ;;  %v122_v10 = vld [vmem:[%s670_s3] sm:$0xff]  ;;  %v123_v11 = vld [vmem:[%s670_s3 + $0x8] sm:$0xff]  ;;  %v124_v12 = vld [vmem:[%s670_s3 + $0x10] sm:$0xff]  ;;  %v428_v14 = vpack.c.bf16 %v33_v9, %v32_v8 }
   0x4   :  { %423 = vmatpush3.bf16.msra.mxu0 %v422_v4  ;;  %v125_v13 = vld [vmem:[%s670_s3 + $0x18] sm:$0xff]  ;;  %v446_v15 = vpack.c.bf16 %v123_v11, %v122_v10  ;;  %v34_v16 = vld [vmem:[%s668_s1 + $0x30] sm:$0xff] }
   0x5   :  { %424 = vmatprep.subr.bf16.mxu0 %v495_v3  ;;  %v35_v17 = vld [vmem:[%s668_s1 + $0x38] sm:$0xff] }
   0x8   :  { %426 = vmatpush3.bf16.msra.mxu0 %v425_v7 }
   0x9   :  { %427 = vmatprep.subr.bf16.mxu0 %v495_v3 }
   0xa   :  { %12 = vsyncpa [#allocation3], 0  ;;  %447 = vmatpush3.bf16.msra.mxu1 %v446_v15  ;;  %v449_v18 = vpack.c.bf16 %v125_v13, %v124_v12  ;;  %v126_v19 = vld [vmem:[%s670_s3 + $0x20] sm:$0xff]  ;;  %v127_v20 = vld [vmem:[%s670_s3 + $0x28] sm:$0xff]  ;;  %v431_v21 = vpack.c.bf16 %v35_v17, %v34_v16  ;;  %vm137_vm1 = vcmask 523264   ;;  %vm223_vm2 = vcmask 261120  }
   0xb   :  { %448 = vmatprep.subr.bf16.mxu1 %v495_v3  ;;  %v36_v22 = vld [vmem:[%s668_s1 + $0x40] sm:$0xff]  ;;  %v37_v23 = vld [vmem:[%s668_s1 + $0x48] sm:$0xff]  ;;  %v452_v24 = vpack.c.bf16 %v127_v20, %v126_v19  ;;  %v38_v26 = vld [vmem:[%s668_s1 + $0x50] sm:$0xff]  ;;  %vm303_vm3 = vcmask 64512  }
   0xc   :  { %429 = vmatpush3.bf16.msra.mxu0 %v428_v14  ;;  %v434_v25 = vpack.c.bf16 %v37_v23, %v36_v22  ;;  %v39_v27 = vld [vmem:[%s668_s1 + $0x58] sm:$0xff]  ;;  %v40_v29 = vld [vmem:[%s668_s1 + $0x60] sm:$0xff]  ;;  %v41_v30 = vld [vmem:[%s668_s1 + $0x68] sm:$0xff] }
   0xd   :  { %430 = vmatprep.subr.bf16.mxu0 %v495_v3  ;;  %v437_v28 = vpack.c.bf16 %v39_v27, %v38_v26  ;;  %v440_v31 = vpack.c.bf16 %v41_v30, %v40_v29  ;;  %v42_v32 = vld [vmem:[%s668_s1 + $0x70] sm:$0xff]  ;;  %v43_v33 = vld [vmem:[%s668_s1 + $0x78] sm:$0xff]  ;;  %v27_v35 = vld [vmem:[%s667_s0] sm:$0xff] }
   0xe   :  { %450 = vmatpush3.bf16.msra.mxu1 %v449_v18  ;;  %v443_v34 = vpack.c.bf16 %v43_v33, %v42_v32  ;;  %v128_v36 = vld [vmem:[%s670_s3 + $0x30] sm:$0xff]  ;;  %v129_v37 = vld [vmem:[%s670_s3 + $0x38] sm:$0xff]  ;;  %v319_v39 = vld [vmem:[%s669_s2] ss:$0 sm:$0xff] }
   0xf   :  { %451 = vmatprep.subr.bf16.mxu1 %v495_v3  ;;  %v455_v38 = vpack.c.bf16 %v129_v37, %v128_v36  ;;  %v212_v40 = vld [vmem:[%s672_s5] sm:$0xff]  ;;  %v213_v41 = vld [vmem:[%s672_s5 + $0x8] sm:$0xff]  ;;  %v214_v47 = vld [vmem:[%s672_s5 + $0x10] sm:$0xff] }
  0x10   :  { %432 = vmatpush3.bf16.msra.mxu0 %v431_v21  ;;  %v458_v45 = vpack.c.bf16 %v213_v41, %v212_v40  ;;  %v215_v48 = vld [vmem:[%s672_s5 + $0x18] sm:$0xff]  ;;  %v320_v50 = vld [vmem:[%s671_s4] ss:$0 sm:$0xff]  ;;  %s498_s5 = smov [#allocation2]  }
  0x11   :  { %433 = vmatprep.subr.bf16.mxu0 %v495_v3  ;;  %v461_v49 = vpack.c.bf16 %v215_v48, %v214_v47  ;;  %v322_v55 = vld [vmem:[%s673_s6] ss:$0 sm:$0xff]  ;;  %s311_s4 = sshll.u32 %s498_s5, 4  ;;  %s312_s4 = int_to_ptr.vmem [resolvable:$true] %s311_s4 }
  0x12   :  { %453 = vmatpush3.bf16.msra.mxu1 %v452_v24  ;;  %s471_s15 = scalar_lea.vmem %s312_s4, 128  ;;  %p476_p1 = scmp.lt.s32.totalorder %s312_s4, %s312_s4 }
  0x13   :  { %454 = vmatprep.subr.bf16.mxu1 %v495_v3  ;;  %p472_p0 = scmp.ne.s32.totalorder %s312_s4, %s471_s15  ;;  %p477_p2 = scmp.lt.s32.totalorder %s471_s15, %s471_s15 }
  0x14   :  { %435 = vmatpush3.bf16.msra.mxu0 %v434_v25 }
  0x15   :  { %436 = vmatprep.subr.bf16.mxu0 %v495_v3  ;;  %p478_p3 = por %p477_p2, %p476_p1 }
  0x16   :  { %456 = vmatpush3.bf16.msra.mxu1 %v455_v38 }
  0x17   :  { %457 = vmatprep.subr.bf16.mxu1 %v495_v3  ;;  %p479_p4 = pnand %p478_p3, %p472_p0 }
  0x18   :  { %438 = vmatpush3.bf16.msra.mxu0 %v437_v28 }
  0x19   :  { %439 = vmatprep.subr.bf16.mxu0 %v495_v3 }
  0x1c   :  { %441 = vmatpush3.bf16.msra.mxu0 %v440_v31 }
  0x1d   :  { %442 = vmatprep.subr.bf16.mxu0 %v495_v3 }
  0x20   :  { %444 = vmatpush3.bf16.msra.mxu0 %v443_v34 }
  0x23   :  { %389 = vmatmul.mubr.f32.vlgmr.msra.gmra.mrb[0].mxu0 %v27_v35 }
  0xf6   :  { %v117_v42 = vpop.f32.mrb[0].mxu0 }
  0xf7   :  { %v118_v43 = vadd.f32 %v319_v39, %v117_v42  ;;  %v390_v44 = vpop.f32.mrb[1].mxu0 }
  0xf9   :  { %v121_v46 = vmax.f32 %v118_v43, 0.0 }
  0xfb   :  { %408 = vmatmul.mubr.msk.f32.vlgmr.msra.gmra.mrb[0].mxu1 %vm137_vm1, %v121_v46 }
  0xfc   :  { %459 = vmatpush3.bf16.msra.mxu1 %v458_v45  ;;  %418 = vmatprep.mubr.msk.f32.mxu1 %vm496_vm0, %v497_v6 }
  0xfd   :  { %460 = vmatprep.subr.bf16.mxu1 %v495_v3 }
 0x100   :  { %462 = vmatpush3.bf16.msra.mxu1 %v461_v49 }
 0x1ce   :  { %v207_v51 = vpop.f32.mrb[0].mxu1 }
 0x1cf   :  { %v208_v52 = vadd.f32 %v320_v50, %v207_v51  ;;  %v409_v53 = vpop.f32.mrb[1].mxu1 }
 0x1d1   :  { %v211_v54 = vmax.f32 %v208_v52, 0.0 }
 0x1d3   :  { %419 = vmatmul.mubr.msk.f32.vlgmr.msra.gmra.mrb[2].mxu1 %vm223_vm2, %v211_v54 }
 0x2a6   :  { %v293_v56 = vpop.f32.mrb[2].mxu1 }
 0x2a7   :  { %v294_v57 = vadd.f32 %v322_v55, %v293_v56  ;;  %v420_v58 = vpop.f32.mrb[3].mxu1 }
 0x2a9   :  { %v324_v59 = vmul.f32 -1.442695, %v294_v57 }
 0x2ab   :  { %467 = vpow2.f32 %v324_v59 }
 0x2b5   :  { %v468_v60 = vpop.eup %467 }
 0x2b6   :  { %v300_v61 = vadd.f32 1.0, %v468_v60 }
 0x2b8   :  { %469 = vrcp.f32 %v300_v61 }
 0x2c2   :  { %v470_v62 = vpop.eup %469 }
 0x2c3   :  { %304 = vst.msk [vmem:[#allocation2] sm:$0xff] %vm303_vm3, %v470_v62 }
 0x2c4   :  { %482 = shalt.err (!%p479_p4)
}
 0x2c5   :  { %s483_s17 = scalar_lea.hbm %s674_s7, 128 }
 0x2c6   :  { %p484_p5 = scmp.ne.s32.totalorder %s674_s7, %s483_s17  ;;  %p487_p6 = scmp.lt.u32.totalorder %s483_s17, %s674_s7 }
 0x2c8   :  { %p489_p7 = pnand %p487_p6, %p484_p5 }
 0x2ca   :  { %492 = shalt.err (!%p489_p7)
}
 0x2cb   :  { %314 = dma.vmem_to_hbm [thread:$0]  %s312_s4, 128, %s674_s7, [#allocation3]  }
 0x2cc   :  { %493 = dma.done.wait [#allocation3], 128  }
 0x2cd   :  { %494 = vsyncadd [#allocation3], 4294967168 }
 0x2ce   :  { %318 = vsyncpa [#allocation3], 1 }

</bundles_post_ra>
